<compile_context>
chip_gen: v5e
topology: v5e:2x2
jax: 0.10.0
libtpu: 0.0.40
codegen_flags: <defaults>
</compile_context>

<pallas_src>
import jax
import jax.numpy as jnp
from jax.experimental import pallas as pl
from jax.experimental.pallas import tpu as pltpu


def _round_up(x, m):
    return (x + m - 1) // m * m


def _backproj_kernel(s_ref, g_ref, tau_ref, y_ref):
    # s_ref:   (tile_n, K)      real-stacked vec(S+) per sample, K = 2*Nch^2
    # g_ref:   (K, tile_px)     real-stacked pixel Gram of D (resident over inner sweep)
    # tau_ref: (1, tile_px)
    # y_ref:   (tile_n, tile_px)
    y_ref[...] = (
        jnp.dot(s_ref[...], g_ref[...], preferred_element_type=jnp.float32)
        - tau_ref[...]
    )


def backproj_forward(S, D, tau, *, tile_n=None, tile_px=None):
    """BackProjLayer.forward.

    Args:
      S:   (N, Nch, Nch) complex Hermitian input (per-sample covariance).
      D:   (Nch, Npx)    complex dictionary parameter.
      tau: (Npx,)        float bias parameter.
    Returns:
      (N, Npx) float32.
    """
    N, Nch, _ = S.shape
    Npx = tau.shape[0]
    K = 2 * Nch * Nch

    # TODO(synk): torch.linalg.eigh has no Pallas equivalent; eigendecomposition is JAX glue.
    Ds, Vs = jnp.linalg.eigh(S)                            # (N, Nch), (N, Nch, Nch)
    lam = jnp.maximum(Ds, 0.0)                             # idx = Ds > 0 selection
    # S+_n = V diag(relu(lambda)) V^H  (Hermitian PSD projection of S_n)
    Splus = jnp.einsum('nck,nk,ndk->ncd', Vs, lam, jnp.conj(Vs))
    Sflat = jnp.concatenate(
        [jnp.real(Splus).reshape(N, Nch * Nch),
         jnp.imag(Splus).reshape(N, Nch * Nch)], axis=-1).astype(jnp.float32)

    # Pixel-Gram RHS built once from D.
    dr = jnp.real(D).astype(jnp.float32)                   # (Nch, Npx)
    di = jnp.imag(D).astype(jnp.float32)
    g1 = dr[:, None, :] * dr[None, :, :] + di[:, None, :] * di[None, :, :]
    g2 = dr[:, None, :] * di[None, :, :] - di[:, None, :] * dr[None, :, :]
    G = jnp.concatenate(
        [g1.reshape(Nch * Nch, Npx), -g2.reshape(Nch * Nch, Npx)], axis=0)

    # Tile sizes: sample tile is a multiple of 8 sublanes (<=256 MXU rows);
    # pixel tile is lane-dense (multiple of 128, <=4096 lanes) so the resident
    # blocks stay within every chip's VMEM (v7x: 64 MiB physical / 32 scoped).
    if tile_n is None:
        tile_n = min(256, _round_up(N, 8))
    else:
        tile_n = _round_up(tile_n, 8)
    if tile_px is None:
        tile_px = 4096 if Npx >= 4096 else _round_up(Npx, 128)
    else:
        tile_px = _round_up(tile_px, 128)

    N_pad = _round_up(N, tile_n)
    Npx_pad = _round_up(Npx, tile_px)

    Sflat = jnp.pad(Sflat, ((0, N_pad - N), (0, 0)))
    G = jnp.pad(G, ((0, 0), (0, Npx_pad - Npx)))
    tau2d = jnp.pad(tau.astype(jnp.float32).reshape(1, Npx),
                    ((0, 0), (0, Npx_pad - Npx)))

    # Pixel tiles OUTER (many parallel steps for v7x's 2 TCs), samples INNER so
    # the G/tau blocks are not re-fetched across the inner sweep.
    grid = (Npx_pad // tile_px, N_pad // tile_n)
    n_px_tiles = grid[0]

    cost = pl.CostEstimate(
        flops=int(2 * N_pad * K * Npx_pad + N_pad * Npx_pad),
        transcendentals=0,
        bytes_accessed=int(4 * (n_px_tiles * N_pad * K     # Sflat streamed per px tile
                                + K * Npx_pad               # G fetched once
                                + Npx_pad                   # tau fetched once
                                + N_pad * Npx_pad)),        # output written once
    )

    # Explicit VMEM budget: double-buffered blocks + slack; fits v5e/v6e/v7x.
    block_bytes = 4 * (tile_n * K + K * tile_px + tile_px + tile_n * tile_px)
    vmem_limit = int(min(max(2 * block_bytes + (4 << 20), 32 << 20), 64 << 20))

    y = pl.pallas_call(
        _backproj_kernel,
        out_shape=jax.ShapeDtypeStruct((N_pad, Npx_pad), jnp.float32),
        grid_spec=pltpu.PrefetchScalarGridSpec(
            num_scalar_prefetch=0,
            grid=grid,
            in_specs=[
                pl.BlockSpec((tile_n, K), lambda j, i: (i, 0)),   # Sflat (streams)
                pl.BlockSpec((K, tile_px), lambda j, i: (0, j)),  # G (resident over i)
                pl.BlockSpec((1, tile_px), lambda j, i: (0, j)),  # tau (resident over i)
            ],
            out_specs=pl.BlockSpec((tile_n, tile_px), lambda j, i: (i, j)),
        ),
        compiler_params=pltpu.CompilerParams(
            dimension_semantics=("parallel", "parallel"),
            vmem_limit_bytes=vmem_limit),
        cost_estimate=cost,
    )(Sflat, G, tau2d)

    return y[:N, :Npx]


def backproj_reference(S, D, tau):
    """Pure-JAX reference matching the PyTorch forward semantics."""
    Ds, Vs = jnp.linalg.eigh(S)
    scale = jnp.sqrt(jnp.maximum(Ds, 0.0))
    W = Vs * scale[:, None, :]                              # (N, Nch, Nch)
    M = jnp.einsum('cp,ncd->npd', jnp.conj(D), W)           # D^H @ W : (N, Npx, Nch)
    y = jnp.sum(jnp.abs(M) ** 2, axis=-1)                   # norm(...)**2 along axis=1
    return (y - tau[None, :]).astype(jnp.float32)


if __name__ == "__main__":
    key = jax.random.PRNGKey(0)
    N_sample, Nch, Npx = 20, 8, 384        # K = 2*Nch^2 = 128 (one MXU K-pass on v5e)
    k1, k2, k3, k4, k5 = jax.random.split(key, 5)

    # Deterministic synthetic parameters (std matches reset_parameters()).
    std = 1e-5
    tau = std * jax.random.normal(k1, (Npx,), dtype=jnp.float32)
    D = (std * jax.random.normal(k2, (Nch, Npx), dtype=jnp.float32)
         + 1j * std * jax.random.normal(k3, (Nch, Npx), dtype=jnp.float32)
         ).astype(jnp.complex64)

    # Input: batch of Hermitian matrices (N_sample, Nch, Nch).
    A = (jax.random.normal(k4, (N_sample, Nch, Nch), dtype=jnp.float32)
         + 1j * jax.random.normal(k5, (N_sample, Nch, Nch), dtype=jnp.float32)
         ).astype(jnp.complex64)
    S = 0.5 * (A + jnp.conj(jnp.swapaxes(A, -1, -2)))

    y_ref = backproj_reference(S, D, tau)

    # Default tiles (single pixel tile, single 24-row sample tile).
    y = jax.block_until_ready(backproj_forward(S, D, tau))
    assert y.shape == (N_sample, Npx) and y.dtype == jnp.float32
    assert jnp.allclose(y, y_ref, rtol=1e-4, atol=1e-7), \
        f"max abs err (defaults) = {float(jnp.max(jnp.abs(y - y_ref)))}"

    # Explicit small tiles: exercises padding on both axes and the multi-tile
    # grid with pixel tiles outer / resident-G inner sample sweep.
    y2 = jax.block_until_ready(backproj_forward(S, D, tau, tile_n=8, tile_px=256))
    assert jnp.allclose(y2, y_ref, rtol=1e-4, atol=1e-7), \
        f"max abs err (tiled) = {float(jnp.max(jnp.abs(y2 - y_ref)))}"

    print("KERNEL_OK")
</pallas_src>

<mosaic_0001>
module attributes {stable_mosaic.version = 11 : i64} {
  func.func @_backproj_kernel(%arg0: i32, %arg1: i32, %arg2: memref<24x128xf32, #tpu.memory_space<vmem>>, %arg3: memref<128x384xf32, #tpu.memory_space<vmem>>, %arg4: memref<1x384xf32, #tpu.memory_space<vmem>>, %arg5: memref<24x384xf32, #tpu.memory_space<vmem>>) attributes {dimension_semantics = [#tpu.dimension_semantics<parallel>, #tpu.dimension_semantics<parallel>], iteration_bounds = array<i64: 1, 1>, scalar_prefetch = 0 : i64, scratch_operands = 0 : i64, tpu.core_type = #tpu.core_type<tc>, window_params = [{transform_indices = @transform_0, window_bounds = array<i64: 24, 128>}, {transform_indices = @transform_1, window_bounds = array<i64: 128, 384>}, {transform_indices = @transform_2, window_bounds = array<i64: 1, 384>}, {transform_indices = @transform_3, window_bounds = array<i64: 24, 384>}]} {
    %c0 = arith.constant 0 : index
    %c0_0 = arith.constant 0 : index
    %0 = vector.load %arg2[%c0, %c0_0] : memref<24x128xf32, #tpu.memory_space<vmem>>, vector<24x128xf32>
    %c0_1 = arith.constant 0 : index
    %c0_2 = arith.constant 0 : index
    %1 = vector.load %arg3[%c0_1, %c0_2] : memref<128x384xf32, #tpu.memory_space<vmem>>, vector<128x384xf32>
    %cst = arith.constant dense<0.000000e+00> : vector<24x384xf32>
    %2 = tpu.matmul %0, %1, %cst {dimension_numbers = #tpu.dot_dimension_numbers<[1], [0], [0], [1], [0, 0, 1, 1], [], []>} : vector<24x128xf32>, vector<128x384xf32>, vector<24x384xf32> -> vector<24x384xf32>
    %c0_3 = arith.constant 0 : index
    %c0_4 = arith.constant 0 : index
    %3 = vector.load %arg4[%c0_3, %c0_4] : memref<1x384xf32, #tpu.memory_space<vmem>>, vector<1x384xf32>
    %4 = vector.broadcast %3 : vector<1x384xf32> to vector<24x384xf32>
    %5 = arith.subf %2, %4 : vector<24x384xf32>
    %c0_5 = arith.constant 0 : index
    %c0_6 = arith.constant 0 : index
    %6 = vector.load %arg5[%c0_5, %c0_6] : memref<24x384xf32, #tpu.memory_space<vmem>>, vector<24x384xf32>
    tpu.vector_store %arg5[%c0_5, %c0_6], %5 {strides = array<i32>} : memref<24x384xf32, #tpu.memory_space<vmem>>, vector<24x384xf32>,
    return
  }
  func.func @transform_0(%arg0: i32, %arg1: i32) -> (i32, i32) {
    %c0_i32 = arith.constant 0 : i32
    %c0_i32_0 = arith.constant 0 : i32
    return %arg1, %c0_i32 : i32, i32
  }
  func.func @transform_1(%arg0: i32, %arg1: i32) -> (i32, i32) {
    %c0_i32 = arith.constant 0 : i32
    %c0_i32_0 = arith.constant 0 : i32
    return %c0_i32, %arg0 : i32, i32
  }
  func.func @transform_2(%arg0: i32, %arg1: i32) -> (i32, i32) {
    %c0_i32 = arith.constant 0 : i32
    %c0_i32_0 = arith.constant 0 : i32
    return %c0_i32, %arg0 : i32, i32
  }
  func.func @transform_3(%arg0: i32, %arg1: i32) -> (i32, i32) {
    %c0_i32 = arith.constant 0 : i32
    return %arg1, %arg0 : i32, i32
  }
}

</mosaic_0001>

<bundles_post_ra>
// kernel: tpu_custom_call.1
= control target key start
LH: loop header
LB: loop body
LE: loop exit
PB: predicated region body
PF: predicated region fallthrough
CT: control target
= control target key end

     0   :  { %8 = vsyncpa [#allocation3], 0  ;;  %s407_s0 = inlined_call_operand.hbm [shape: f32[24,128], index: 0, kind: input, shape index: {}]   ;;  %s408_s1 = inlined_call_operand.hbm [shape: f32[128,384], index: 1, kind: input, shape index: {}]   ;;  %s409_s2 = inlined_call_operand.hbm [shape: f32[1,384], index: 2, kind: input, shape index: {}]   ;;  %s410_s3 = inlined_call_operand.hbm [shape: f32[24,384], index: 3, kind: output, shape index: {}]  }
   0x1   :  { %9 = vsyncpa [#allocation6], 0  ;;  %s28_s14 = sshll.u32 %s408_s1, 4  ;;  %s29_s14 = int_to_ptr.hbm [resolvable:$true] %s28_s14 }
   0x2   :  { %10 = vsyncpa [#allocation4], 0  ;;  %s361_s15 = smov [#allocation5]   ;;  %s15_s19 = sshll.u32 %s407_s0, 4  ;;  %s16_s19 = int_to_ptr.hbm [resolvable:$true] %s15_s19 }
   0x3   :  { %s30_s16 = sshll.u32 %s361_s15, 4  ;;  %s362_s20 = smov 384   ;;  %s31_s16 = int_to_ptr.vmem [resolvable:$true] %s30_s16 }
   0x4   :  { %s363_s21 = smov 24   ;;  %s364_s22 = smov [#allocation2]  }
   0x5   :  { %36 = dma.hbm_to_vmem [thread:$0]  %s29_s14, 6144, %s31_s16, [#allocation6], %s362_s20, %s362_s20, %s363_s21  }
   0x6   :  { %s17_s23 = sshll.u32 %s364_s22, 4  ;;  %s365_s1 = smov 128   ;;  %s18_s23 = int_to_ptr.vmem [resolvable:$true] %s17_s23 }
   0x7   :  { %s366_s24 = smov 8   ;;  %s42_s27 = sshll.u32 %s409_s2, 4  ;;  %s43_s27 = int_to_ptr.hbm [resolvable:$true] %s42_s27 }
   0x8   :  { %23 = dma.hbm_to_vmem [thread:$0]  %s16_s19, 384, %s18_s23, [#allocation3], %s365_s1, %s365_s1, %s366_s24  }
   0x9   :  { %s367_s28 = smov [#allocation7]  }
   0xa   :  { %s44_s0 = sshll.u32 %s367_s28, 4  ;;  %s45_s0 = int_to_ptr.vmem [resolvable:$true] %s44_s0 }
   0xb   :  { %47 = dma.hbm_to_vmem [thread:$0]  %s43_s27, 48, %s45_s0, [#allocation6]  }
   0xc   :  { %355 = dma.done.wait [#allocation3], 384  }
   0xd   :  { %356 = vsyncadd [#allocation3], 4294966912 }
   0xe   :  { %357 = dma.done.wait [#allocation6], 6192  }
   0xf   :  { %358 = vsyncadd [#allocation6], 4294961104  ;;  %v110_v0 = vld [vmem:[#allocation5 + $0x178] sm:$0xff]  ;;  %v107_v1 = vld [vmem:[#allocation5 + $0x160] sm:$0xff]  ;;  %s368_s2 = smov [#allocation8]   ;;  %s221_s5 = sshll.u32 %s410_s3, 4  ;;  %s222_s5 = int_to_ptr.hbm [resolvable:$true] %s221_s5 }
  0x10   :  { %163 = vmatpush.msra.mxu2 %v110_v0  ;;  %v109_v2 = vld [vmem:[#allocation5 + $0x170] sm:$0xff]  ;;  %v108_v3 = vld [vmem:[#allocation5 + $0x168] sm:$0xff]  ;;  %v106_v5 = vld [vmem:[#allocation5 + $0x158] sm:$0xff]  ;;  %s219_s29 = sshll.u32 %s368_s2, 4  ;;  %s220_s29 = int_to_ptr.vmem [resolvable:$true] %s219_s29 }
  0x11   :  { %v104_v4 = vld [vmem:[#allocation5 + $0x148] sm:$0xff]  ;;  %137 = vmatpush.msra.mxu1 %v109_v2  ;;  %235 = vmatpush.msra.mxu3 %v108_v3  ;;  %v105_v6 = vld [vmem:[#allocation5 + $0x150] sm:$0xff]  ;;  %v103_v7 = vld [vmem:[#allocation5 + $0x140] sm:$0xff] }
  0x12   :  { %164 = vmatpush.msra.mxu2 %v107_v1  ;;  %v102_v8 = vld [vmem:[#allocation5 + $0x138] sm:$0xff]  ;;  %111 = vmatpush.msra.mxu0 %v108_v3  ;;  %v101_v9 = vld [vmem:[#allocation5 + $0x130] sm:$0xff]  ;;  %v100_v10 = vld [vmem:[#allocation5 + $0x128] sm:$0xff] }
  0x13   :  { %138 = vmatpush.msra.mxu1 %v106_v5  ;;  %236 = vmatpush.msra.mxu3 %v105_v6  ;;  %v99_v11 = vld [vmem:[#allocation5 + $0x120] sm:$0xff]  ;;  %v98_v12 = vld [vmem:[#allocation5 + $0x118] sm:$0xff]  ;;  %v97_v13 = vld [vmem:[#allocation5 + $0x110] sm:$0xff] }
  0x14   :  { %165 = vmatpush.msra.mxu2 %v104_v4  ;;  %112 = vmatpush.msra.mxu0 %v105_v6  ;;  %v96_v14 = vld [vmem:[#allocation5 + $0x108] sm:$0xff]  ;;  %v95_v15 = vld [vmem:[#allocation5 + $0x100] sm:$0xff]  ;;  %v94_v16 = vld [vmem:[#allocation5 + $0xf8] sm:$0xff] }
  0x15   :  { %139 = vmatpush.msra.mxu1 %v103_v7  ;;  %237 = vmatpush.msra.mxu3 %v102_v8  ;;  %v93_v17 = vld [vmem:[#allocation5 + $0xf0] sm:$0xff]  ;;  %v92_v18 = vld [vmem:[#allocation5 + $0xe8] sm:$0xff]  ;;  %v91_v19 = vld [vmem:[#allocation5 + $0xe0] sm:$0xff] }
  0x16   :  { %166 = vmatpush.msra.mxu2 %v101_v9  ;;  %113 = vmatpush.msra.mxu0 %v102_v8  ;;  %v90_v20 = vld [vmem:[#allocation5 + $0xd8] sm:$0xff]  ;;  %v89_v21 = vld [vmem:[#allocation5 + $0xd0] sm:$0xff]  ;;  %v88_v22 = vld [vmem:[#allocation5 + $0xc8] sm:$0xff] }
  0x17   :  { %140 = vmatpush.msra.mxu1 %v100_v10  ;;  %238 = vmatpush.msra.mxu3 %v99_v11  ;;  %v87_v23 = vld [vmem:[#allocation5 + $0xc0] sm:$0xff]  ;;  %v86_v24 = vld [vmem:[#allocation5 + $0xb8] sm:$0xff]  ;;  %v85_v25 = vld [vmem:[#allocation5 + $0xb0] sm:$0xff] }
  0x18   :  { %167 = vmatpush.msra.mxu2 %v98_v12  ;;  %114 = vmatpush.msra.mxu0 %v99_v11  ;;  %v84_v26 = vld [vmem:[#allocation5 + $0xa8] sm:$0xff]  ;;  %v83_v27 = vld [vmem:[#allocation5 + $0xa0] sm:$0xff]  ;;  %v82_v28 = vld [vmem:[#allocation5 + $0x98] sm:$0xff] }
  0x19   :  { %141 = vmatpush.msra.mxu1 %v97_v13  ;;  %239 = vmatpush.msra.mxu3 %v96_v14  ;;  %v81_v29 = vld [vmem:[#allocation5 + $0x90] sm:$0xff]  ;;  %v80_v30 = vld [vmem:[#allocation5 + $0x88] sm:$0xff]  ;;  %v79_v31 = vld [vmem:[#allocation5 + $0x80] sm:$0xff] }
  0x1a   :  { %168 = vmatpush.msra.mxu2 %v95_v15  ;;  %115 = vmatpush.msra.mxu0 %v96_v14  ;;  %v78_v32 = vld [vmem:[#allocation5 + $0x78] sm:$0xff]  ;;  %v77_v33 = vld [vmem:[#allocation5 + $0x70] sm:$0xff]  ;;  %v76_v34 = vld [vmem:[#allocation5 + $0x68] sm:$0xff] }
  0x1b   :  { %142 = vmatpush.msra.mxu1 %v94_v16  ;;  %240 = vmatpush.msra.mxu3 %v93_v17  ;;  %v75_v35 = vld [vmem:[#allocation5 + $0x60] sm:$0xff]  ;;  %v74_v36 = vld [vmem:[#allocation5 + $0x58] sm:$0xff]  ;;  %v73_v37 = vld [vmem:[#allocation5 + $0x50] sm:$0xff] }
  0x1c   :  { %169 = vmatpush.msra.mxu2 %v92_v18  ;;  %116 = vmatpush.msra.mxu0 %v93_v17  ;;  %v72_v38 = vld [vmem:[#allocation5 + $0x48] sm:$0xff]  ;;  %v71_v39 = vld [vmem:[#allocation5 + $0x40] sm:$0xff]  ;;  %v70_v40 = vld [vmem:[#allocation5 + $0x38] sm:$0xff] }
  0x1d   :  { %143 = vmatpush.msra.mxu1 %v91_v19  ;;  %241 = vmatpush.msra.mxu3 %v90_v20  ;;  %v69_v41 = vld [vmem:[#allocation5 + $0x30] sm:$0xff]  ;;  %v68_v42 = vld [vmem:[#allocation5 + $0x28] sm:$0xff]  ;;  %v67_v43 = vld [vmem:[#allocation5 + $0x20] sm:$0xff] }
  0x1e   :  { %170 = vmatpush.msra.mxu2 %v89_v21  ;;  %117 = vmatpush.msra.mxu0 %v90_v20  ;;  %v66_v44 = vld [vmem:[#allocation5 + $0x18] sm:$0xff]  ;;  %v65_v45 = vld [vmem:[#allocation5 + $0x10] sm:$0xff]  ;;  %v60_v46 = vld [vmem:[#allocation2] sm:$0xff] }
  0x1f   :  { %144 = vmatpush.msra.mxu1 %v88_v22  ;;  %242 = vmatpush.msra.mxu3 %v87_v23  ;;  %v64_v47 = vld [vmem:[#allocation5 + $0x8] sm:$0xff]  ;;  %v63_v48 = vld [vmem:[#allocation5] sm:$0xff]  ;;  %v61_v49 = vld [vmem:[#allocation2 + $0x8] sm:$0xff] }
  0x20   :  { %171 = vmatpush.msra.mxu2 %v86_v24  ;;  %118 = vmatpush.msra.mxu0 %v87_v23  ;;  %v62_v50 = vld [vmem:[#allocation2 + $0x10] sm:$0xff]  ;;  %v189_v51 = vld [vmem:[#allocation7] sm:$0x7] }
  0x21   :  { %145 = vmatpush.msra.mxu1 %v85_v25  ;;  %243 = vmatpush.msra.mxu3 %v84_v26  ;;  %v192_v52 = vperm.slane %v189_v51, 1  ;;  %v191_v55 = vperm.slane %v189_v51, 0  ;;  %v193_v56 = vperm.slane %v189_v51, 2 }
  0x22   :  { %172 = vmatpush.msra.mxu2 %v83_v27  ;;  %119 = vmatpush.msra.mxu0 %v84_v26 }
  0x23   :  { %146 = vmatpush.msra.mxu1 %v82_v28  ;;  %244 = vmatpush.msra.mxu3 %v81_v29 }
  0x24   :  { %173 = vmatpush.msra.mxu2 %v80_v30  ;;  %120 = vmatpush.msra.mxu0 %v81_v29 }
  0x25   :  { %147 = vmatpush.msra.mxu1 %v79_v31  ;;  %245 = vmatpush.msra.mxu3 %v78_v32 }
  0x26   :  { %174 = vmatpush.msra.mxu2 %v77_v33  ;;  %121 = vmatpush.msra.mxu0 %v78_v32 }
  0x27   :  { %148 = vmatpush.msra.mxu1 %v76_v34  ;;  %246 = vmatpush.msra.mxu3 %v75_v35 }
  0x28   :  { %175 = vmatpush.msra.mxu2 %v74_v36  ;;  %122 = vmatpush.msra.mxu0 %v75_v35 }
  0x29   :  { %149 = vmatpush.msra.mxu1 %v73_v37  ;;  %247 = vmatpush.msra.mxu3 %v72_v38 }
  0x2a   :  { %176 = vmatpush.msra.mxu2 %v71_v39  ;;  %123 = vmatpush.msra.mxu0 %v72_v38 }
  0x2b   :  { %150 = vmatpush.msra.mxu1 %v70_v40  ;;  %248 = vmatpush.msra.mxu3 %v69_v41 }
  0x2c   :  { %177 = vmatpush.msra.mxu2 %v68_v42  ;;  %124 = vmatpush.msra.mxu0 %v69_v41 }
  0x2d   :  { %151 = vmatpush.msra.mxu1 %v67_v43  ;;  %249 = vmatpush.msra.mxu3 %v66_v44 }
  0x2e   :  { %178 = vmatpush.msra.mxu2 %v65_v45  ;;  %125 = vmatpush.msra.mxu0 %v66_v44 }
  0x2f   :  { %179 = vmatmul.f32.vlgmr.msra.gmra.mxu2 %v60_v46  ;;  %152 = vmatpush.msra.mxu1 %v64_v47 }
  0x30   :  { %153 = vmatmul.f32.vlgmr.msra.gmra.mxu1 %v60_v46  ;;  %250 = vmatpush.msra.mxu3 %v63_v48 }
  0x31   :  { %130 = vmatmul.f32.vlgmr.msra.gmra.mxu3 %v61_v49  ;;  %126 = vmatpush.msra.mxu0 %v63_v48 }
  0x32   :  { %127 = vmatmul.f32.vlgmr.msra.gmra.mxu0 %v60_v46 }
  0x37   :  { %182 = vmatmul.f32.gmra.mxu2 %v61_v49 }
  0x38   :  { %156 = vmatmul.f32.gmra.mxu1 %v61_v49 }
  0x39   :  { %133 = vmatmul.f32.gmra.mxu3 %v62_v50 }
  0x3f   :  { %185 = vmatmul.f32.gmra.mxu2 %v62_v50 }
  0x40   :  { %159 = vmatmul.f32.gmra.mxu1 %v62_v50 }
  0xad   :  { %v154_v53 = vpop.f32.mrf.mxu1 }
  0xae   :  { %v198_v54 = vsub.f32 %v154_v53, %v192_v52 }
  0xaf   :  { %v128_v57 = vpop.f32.mrf.mxu0 }
  0xb0   :  { %207 = vst [vmem:[#allocation8 + $0x8] sm:$0xff] %v198_v54  ;;  %v197_v58 = vsub.f32 %v128_v57, %v191_v55 }
  0xb2   :  { %v180_v59 = vpop.f32.mrf.mxu2  ;;  %206 = vst [vmem:[#allocation8] sm:$0xff] %v197_v58 }
  0xb3   :  { %v199_v60 = vsub.f32 %v180_v59, %v193_v56 }
  0xb4   :  { %v131_v61 = vpop.f32.mrf.mxu3 }
  0xb5   :  { %208 = vst [vmem:[#allocation8 + $0x10] sm:$0xff] %v199_v60  ;;  %v200_v62 = vsub.f32 %v131_v61, %v191_v55  ;;  %v157_v63 = vpop.f32.mrf.mxu1 }
  0xb6   :  { %v201_v0 = vsub.f32 %v157_v63, %v192_v52 }
  0xb7   :  { %209 = vst [vmem:[#allocation8 + $0x18] sm:$0xff] %v200_v62 }
  0xb8   :  { %210 = vst [vmem:[#allocation8 + $0x20] sm:$0xff] %v201_v0 }
  0xba   :  { %v183_v1 = vpop.f32.mrf.mxu2 }
  0xbb   :  { %v202_v2 = vsub.f32 %v183_v1, %v193_v56 }
  0xbc   :  { %v134_v3 = vpop.f32.mrf.mxu3 }
  0xbd   :  { %211 = vst [vmem:[#allocation8 + $0x28] sm:$0xff] %v202_v2  ;;  %v203_v4 = vsub.f32 %v134_v3, %v191_v55  ;;  %v160_v5 = vpop.f32.mrf.mxu1 }
  0xbe   :  { %v204_v6 = vsub.f32 %v160_v5, %v192_v52 }
  0xbf   :  { %212 = vst [vmem:[#allocation8 + $0x30] sm:$0xff] %v203_v4 }
  0xc0   :  { %213 = vst [vmem:[#allocation8 + $0x38] sm:$0xff] %v204_v6 }
  0xc2   :  { %v186_v7 = vpop.f32.mrf.mxu2 }
  0xc3   :  { %v205_v8 = vsub.f32 %v186_v7, %v193_v56 }
  0xc5   :  { %214 = vst [vmem:[#allocation8 + $0x40] sm:$0xff] %v205_v8 }
  0xc6   :  { %227 = dma.vmem_to_hbm [thread:$0]  %s220_s29, 1152, %s222_s5, [#allocation4], %s362_s20, %s362_s20, %s363_s21  }
  0xc7   :  { %359 = dma.done.wait [#allocation4], 1152  }
  0xc8   :  { %360 = vsyncadd [#allocation4], 4294966144 }
  0xc9   :  { %232 = vsyncpa [#allocation3], 1 }
  0xca   :  { %233 = vsyncpa [#allocation6], 1 }
  0xcb   :  { %234 = vsyncpa [#allocation4], 1 }

</bundles_post_ra>
